<compile_context>
chip_gen: v7x
topology: tpu7x:2x2x1
jax: 0.10.0
libtpu: 0.0.40
codegen_flags: <defaults>
</compile_context>

<pallas_src>
import jax
import jax.numpy as jnp
from jax.experimental import pallas as pl
from jax.experimental.pallas import tpu as pltpu


# ----------------------------------------------------------------------------
# Kernels
# ----------------------------------------------------------------------------
def _scse_resident_kernel(x_ref, w1_ref, w2t_ref, ws_ref, o_ref):
    """One-pass kernel: whole (C, S) slab for one batch element is resident.

    x_ref  : (1, C, S)  input slab (C on sublanes, S on lanes)
    w1_ref : (C, Ch)    first cSE linear  (original orientation), f32
    w2t_ref: (C, Ch)    second cSE linear (pre-transposed),       f32
    ws_ref : (C, 1)     sSE 1x1-conv weight,                      f32
    """
    x = x_ref[0]                                   # (C, S), native dtype
    inv_s = 1.0 / x.shape[1]

    # --- cSE: GAP -> W1 -> ReLU -> W2 -> sigmoid (tiny; VPU/XLU/EUP only) ---
    # GAP with f32 accumulation: (C, 1)
    gap = jnp.sum(x, axis=1, keepdims=True, dtype=jnp.float32) * inv_s
    # h1[0, j] = sum_c gap[c] * w1[c, j]          -> (1, Ch)
    h1 = jnp.maximum(jnp.sum(w1_ref[...] * gap, axis=0, keepdims=True), 0.0)
    # s[c, 0]  = sum_j h1[j] * w2[j, c]           -> (C, 1)   (w2t[c, j] = w2[j, c])
    s = jax.nn.sigmoid(jnp.sum(w2t_ref[...] * h1, axis=1, keepdims=True))

    # --- sSE: per-pixel gate over channels (VPU multiply + sublane reduce) ---
    # Multiply in the input dtype (no full-tile f32 upcast for bf16 inputs),
    # accumulate the C-sublane reduce in f32.
    prod = x * ws_ref[...].astype(x.dtype)                           # (C, S)
    m = jax.nn.sigmoid(jnp.sum(prod, axis=0, keepdims=True,
                               dtype=jnp.float32))                   # (1, S)

    # --- Fused scaling: x*s + x*m == x*(s + m) ---
    scale = s.astype(x.dtype) + m.astype(x.dtype)                    # (C, S)
    o_ref[0] = x * scale


def _scse_stream_kernel(s_ref, ws_ref, x_ref, o_ref):
    """Streaming kernel (fallback): cSE gate precomputed, sSE + scaling fused.

    s_ref : (1, C, 1)  per-channel cSE gate, f32 (sigmoid already applied)
    ws_ref: (C, 1)     sSE 1x1-conv weight, f32
    x_ref : (1, C, ts) input tile
    """
    x = x_ref[0]                                                     # (C, ts)
    prod = x * ws_ref[...].astype(x.dtype)
    m = jax.nn.sigmoid(jnp.sum(prod, axis=0, keepdims=True,
                               dtype=jnp.float32))                   # (1, ts)
    scale = s_ref[0].astype(x.dtype) + m.astype(x.dtype)             # (C, ts)
    o_ref[0] = x * scale


# ----------------------------------------------------------------------------
# Sizing helpers
# ----------------------------------------------------------------------------
def _vmem_capacity_bytes():
    """Physical VMEM per core; conservative 64 MiB default (safe on v7x)."""
    try:
        info = pltpu.get_tpu_info()
        cap = getattr(info, "vmem_capacity_bytes", None)
        if cap:
            return int(cap)
    except Exception:
        pass
    return 64 * 1024 * 1024


def _choose_tile_s(S, C, itemsize, target_bytes):
    """Spatial tile sized by bytes: largest 128-multiple with block ~target.

    Returns either a multiple of 128 (< S, ragged tail handled by pl.cdiv +
    masked stores) or the full S extent (always a legal block shape).
    """
    per_col = max(1, C * itemsize)
    ts = (target_bytes // per_col) // 128 * 128
    ts = max(128, ts)
    if ts >= S:
        return S
    return ts


# ----------------------------------------------------------------------------
# Wrapper
# ----------------------------------------------------------------------------
def scse_layer(x_nchw, w1, w2, w_sse):
    """x_nchw: (B, C, H, W); w1: (C, C//2); w2: (C//2, C); w_sse: (C, 1)."""
    B, C, H, W = x_nchw.shape
    Ch = C // 2
    S = H * W
    x = x_nchw.reshape(B, C, S)                    # free reshape, native layout
    itemsize = jnp.dtype(x.dtype).itemsize

    # VMEM budgeting (generation-aware): explicit scoped limit, and keep our
    # double-buffered blocks (2 x in + 2 x out) under ~half of it.
    vmem_cap = _vmem_capacity_bytes()
    vmem_limit = int(min(vmem_cap * 3 // 4, 96 * 1024 * 1024))
    block_budget = vmem_limit // 2

    w1f = w1.astype(jnp.float32)                   # (C, Ch)
    w2tf = w2.astype(jnp.float32).T                # (C, Ch)  pre-transposed
    wsf = w_sse.astype(jnp.float32)                # (C, 1)

    slab_bytes = C * S * itemsize

    if 4 * slab_bytes <= block_budget:
        # ------------------ one-pass, per-batch VMEM-resident -----------------
        # Note: grid=(B,) gives B parallel units for megacore sharding (v7x has
        # 2 TCs; B >= 2 keeps both busy).  For B == 1 with tiny slabs the
        # streaming path would expose more parallelism but costs an extra HBM
        # pass, so resident stays the default whenever it fits.
        out = pl.pallas_call(
            _scse_resident_kernel,
            out_shape=jax.ShapeDtypeStruct((B, C, S), x.dtype),
            grid_spec=pltpu.PrefetchScalarGridSpec(
                num_scalar_prefetch=0,
                grid=(B,),
                in_specs=[
                    pl.BlockSpec((1, C, S), lambda b: (b, 0, 0)),   # x slab
                    pl.BlockSpec((C, Ch), lambda b: (0, 0)),        # w1
                    pl.BlockSpec((C, Ch), lambda b: (0, 0)),        # w2^T
                    pl.BlockSpec((C, 1), lambda b: (0, 0)),         # sSE weight
                ],
                out_specs=pl.BlockSpec((1, C, S), lambda b: (b, 0, 0)),
            ),
            compiler_params=pltpu.CompilerParams(
                dimension_semantics=("parallel",),
                vmem_limit_bytes=vmem_limit),
        )(x, w1f, w2tf, wsf)
    else:
        # ------------------- two-pass streaming fallback ----------------------
        # cSE gate hoisted to XLA (one extra read of x); kept in f32 (tiny).
        gap = jnp.mean(x.astype(jnp.float32), axis=2)                # (B, C)
        h1 = jnp.maximum(gap @ w1f, 0.0)                             # (B, Ch)
        s = jax.nn.sigmoid(h1 @ w2.astype(jnp.float32))[:, :, None]  # (B, C, 1) f32

        target = max(1 << 20, min(4 << 20, block_budget // 8))
        ts = _choose_tile_s(S, C, itemsize, target)
        n_s = pl.cdiv(S, ts)

        out = pl.pallas_call(
            _scse_stream_kernel,
            out_shape=jax.ShapeDtypeStruct((B, C, S), x.dtype),
            grid_spec=pltpu.PrefetchScalarGridSpec(
                num_scalar_prefetch=0,
                grid=(B, n_s),
                in_specs=[
                    pl.BlockSpec((1, C, 1), lambda b, si: (b, 0, 0)),   # cSE gate
                    pl.BlockSpec((C, 1), lambda b, si: (0, 0)),          # sSE weight
                    pl.BlockSpec((1, C, ts), lambda b, si: (b, 0, si)),  # x tile
                ],
                out_specs=pl.BlockSpec((1, C, ts), lambda b, si: (b, 0, si)),
            ),
            compiler_params=pltpu.CompilerParams(
                dimension_semantics=("parallel", "parallel"),
                vmem_limit_bytes=vmem_limit),
        )(s, wsf, x)

    return out.reshape(B, C, H, W)                 # free reshape back to NCHW


# ----------------------------------------------------------------------------
# Pure-JAX reference mirroring the PyTorch module
# ----------------------------------------------------------------------------
def _reference(x_nchw, w1, w2, w_sse):
    gap = jnp.mean(x_nchw, axis=(2, 3))                      # (B, C)
    h = jnp.maximum(gap @ w1, 0.0)                           # (B, C//2)
    s = jax.nn.sigmoid(h @ w2)                               # (B, C)
    cse = x_nchw * s[:, :, None, None]
    m = jax.nn.sigmoid(jnp.einsum("bchw,c->bhw", x_nchw, w_sse[:, 0]))
    sse = x_nchw * m[:, None, :, :]
    return cse + sse


if __name__ == "__main__":
    key = jax.random.PRNGKey(0)
    kx, k1, k2, k3 = jax.random.split(key, 4)

    B, C, H, W = 2, 4, 16, 16
    x = jax.random.normal(kx, (B, C, H, W), dtype=jnp.float32)

    # Deterministic synthetic parameters (shapes match the PyTorch module):
    #   Linear(C, C//2, bias=False)   -> used here as (C, C//2)
    #   Linear(C//2, C, bias=False)   -> used here as (C//2, C)
    #   Conv2d(C, 1, k=1, bias=False) -> used here as (C, 1)
    w1 = jax.random.normal(k1, (C, C // 2), dtype=jnp.float32) * 0.5
    w2 = jax.random.normal(k2, (C // 2, C), dtype=jnp.float32) * 0.5
    w_sse = jax.random.normal(k3, (C, 1), dtype=jnp.float32) * 0.5

    out = jax.block_until_ready(scse_layer(x, w1, w2, w_sse))

    ref = _reference(x, w1, w2, w_sse)
    assert out.shape == (B, C, H, W)
    assert jnp.allclose(out, ref, atol=1e-5, rtol=1e-5), "mismatch vs reference"

    print("KERNEL_OK")
</pallas_src>

<mosaic_0001>
module attributes {stable_mosaic.version = 11 : i64} {
  func.func @_scse_resident_kernel(%arg0: i32, %arg1: memref<1x4x256xf32, #tpu.memory_space<vmem>>, %arg2: memref<4x2xf32, #tpu.memory_space<vmem>>, %arg3: memref<4x2xf32, #tpu.memory_space<vmem>>, %arg4: memref<4x1xf32, #tpu.memory_space<vmem>>, %arg5: memref<1x4x256xf32, #tpu.memory_space<vmem>>) attributes {dimension_semantics = [#tpu.dimension_semantics<parallel>], iteration_bounds = array<i64: 2>, scalar_prefetch = 0 : i64, scratch_operands = 0 : i64, tpu.core_type = #tpu.core_type<tc>, window_params = [{transform_indices = @transform_0, window_bounds = array<i64: 1, 4, 256>}, {pipeline_mode = #tpu.pipeline_mode<synchronous>, transform_indices = @transform_1, window_bounds = array<i64: 4, 2>}, {pipeline_mode = #tpu.pipeline_mode<synchronous>, transform_indices = @transform_2, window_bounds = array<i64: 4, 2>}, {pipeline_mode = #tpu.pipeline_mode<synchronous>, transform_indices = @transform_3, window_bounds = array<i64: 4, 1>}, {transform_indices = @transform_4, window_bounds = array<i64: 1, 4, 256>}]} {
    %c0 = arith.constant 0 : index
    %c0_0 = arith.constant 0 : index
    %c0_1 = arith.constant 0 : index
    %0 = vector.load %arg1[%c0, %c0_0, %c0_1] : memref<1x4x256xf32, #tpu.memory_space<vmem>>, vector<1x4x256xf32>
    %1 = vector.shape_cast %0 : vector<1x4x256xf32> to vector<4x256xf32>
    %cst = arith.constant dense<0.000000e+00> : vector<4xf32>
    %2 = vector.multi_reduction <add>, %1, %cst [1] : vector<4x256xf32> to vector<4xf32>
    %3 = vector.shape_cast %2 : vector<4xf32> to vector<4x1xf32>
    %cst_2 = arith.constant 3.906250e-03 : f32
    %4 = vector.broadcast %cst_2 : f32 to vector<4x1xf32>
    %5 = arith.mulf %3, %4 : vector<4x1xf32>
    %c0_3 = arith.constant 0 : index
    %c0_4 = arith.constant 0 : index
    %6 = vector.load %arg2[%c0_3, %c0_4] : memref<4x2xf32, #tpu.memory_space<vmem>>, vector<4x2xf32>
    %7 = vector.broadcast %5 : vector<4x1xf32> to vector<4x2xf32>
    %8 = arith.mulf %6, %7 : vector<4x2xf32>
    %cst_5 = arith.constant dense<0.000000e+00> : vector<2xf32>
    %9 = vector.multi_reduction <add>, %8, %cst_5 [0] : vector<4x2xf32> to vector<2xf32>
    %10 = vector.shape_cast %9 : vector<2xf32> to vector<1x2xf32>
    %cst_6 = arith.constant 0.000000e+00 : f32
    %11 = vector.broadcast %cst_6 : f32 to vector<1x2xf32>
    %12 = arith.maximumf %10, %11 : vector<1x2xf32>
    %c0_7 = arith.constant 0 : index
    %c0_8 = arith.constant 0 : index
    %13 = vector.load %arg3[%c0_7, %c0_8] : memref<4x2xf32, #tpu.memory_space<vmem>>, vector<4x2xf32>
    %14 = vector.broadcast %12 : vector<1x2xf32> to vector<4x2xf32>
    %15 = arith.mulf %13, %14 : vector<4x2xf32>
    %cst_9 = arith.constant dense<0.000000e+00> : vector<4xf32>
    %16 = vector.multi_reduction <add>, %15, %cst_9 [1] : vector<4x2xf32> to vector<4xf32>
    %17 = vector.shape_cast %16 : vector<4xf32> to vector<4x1xf32>
    %18 = arith.negf %17 : vector<4x1xf32>
    %19 = math.exp %18 : vector<4x1xf32>
    %cst_10 = arith.constant 1.000000e+00 : f32
    %20 = vector.broadcast %cst_10 : f32 to vector<4x1xf32>
    %21 = arith.addf %20, %19 : vector<4x1xf32>
    %22 = arith.divf %20, %21 : vector<4x1xf32>
    %c0_11 = arith.constant 0 : index
    %c0_12 = arith.constant 0 : index
    %23 = vector.load %arg4[%c0_11, %c0_12] : memref<4x1xf32, #tpu.memory_space<vmem>>, vector<4x1xf32>
    %24 = vector.broadcast %23 : vector<4x1xf32> to vector<4x256xf32>
    %25 = arith.mulf %1, %24 : vector<4x256xf32>
    %cst_13 = arith.constant dense<0.000000e+00> : vector<256xf32>
    %26 = vector.multi_reduction <add>, %25, %cst_13 [0] : vector<4x256xf32> to vector<256xf32>
    %27 = vector.shape_cast %26 : vector<256xf32> to vector<1x256xf32>
    %28 = arith.negf %27 : vector<1x256xf32>
    %29 = math.exp %28 : vector<1x256xf32>
    %cst_14 = arith.constant 1.000000e+00 : f32
    %30 = vector.broadcast %cst_14 : f32 to vector<1x256xf32>
    %31 = arith.addf %30, %29 : vector<1x256xf32>
    %32 = arith.divf %30, %31 : vector<1x256xf32>
    %33 = vector.broadcast %22 : vector<4x1xf32> to vector<4x256xf32>
    %34 = vector.broadcast %32 : vector<1x256xf32> to vector<4x256xf32>
    %35 = arith.addf %33, %34 : vector<4x256xf32>
    %36 = arith.mulf %1, %35 : vector<4x256xf32>
    %c0_15 = arith.constant 0 : index
    %c0_16 = arith.constant 0 : index
    %c0_17 = arith.constant 0 : index
    %37 = vector.load %arg5[%c0_15, %c0_16, %c0_17] : memref<1x4x256xf32, #tpu.memory_space<vmem>>, vector<1x4x256xf32>
    %38 = vector.shape_cast %37 : vector<1x4x256xf32> to vector<4x256xf32>
    %39 = vector.shape_cast %36 : vector<4x256xf32> to vector<1x4x256xf32>
    tpu.vector_store %arg5[%c0_15, %c0_16, %c0_17], %39 {strides = array<i32>} : memref<1x4x256xf32, #tpu.memory_space<vmem>>, vector<1x4x256xf32>,
    return
  }
  func.func @transform_0(%arg0: i32) -> (i32, i32, i32) {
    %c0_i32 = arith.constant 0 : i32
    %c0_i32_0 = arith.constant 0 : i32
    %c0_i32_1 = arith.constant 0 : i32
    return %arg0, %c0_i32, %c0_i32_0 : i32, i32, i32
  }
  func.func @transform_1(%arg0: i32) -> (i32, i32) {
    %c0_i32 = arith.constant 0 : i32
    %c0_i32_0 = arith.constant 0 : i32
    %c0_i32_1 = arith.constant 0 : i32
    return %c0_i32, %c0_i32_0 : i32, i32
  }
  func.func @transform_2(%arg0: i32) -> (i32, i32) {
    %c0_i32 = arith.constant 0 : i32
    %c0_i32_0 = arith.constant 0 : i32
    %c0_i32_1 = arith.constant 0 : i32
    return %c0_i32, %c0_i32_0 : i32, i32
  }
  func.func @transform_3(%arg0: i32) -> (i32, i32) {
    %c0_i32 = arith.constant 0 : i32
    %c0_i32_0 = arith.constant 0 : i32
    %c0_i32_1 = arith.constant 0 : i32
    return %c0_i32, %c0_i32_0 : i32, i32
  }
  func.func @transform_4(%arg0: i32) -> (i32, i32, i32) {
    %c0_i32 = arith.constant 0 : i32
    %c0_i32_0 = arith.constant 0 : i32
    %c0_i32_1 = arith.constant 0 : i32
    return %arg0, %c0_i32, %c0_i32_0 : i32, i32, i32
  }
}

</mosaic_0001>

<bundles_post_ra>
// kernel: tpu_custom_call.1
= control target key start
LH: loop header
LB: loop body
LE: loop exit
PB: predicated region body
PF: predicated region fallthrough
CT: control target
= control target key end

     0   :  { %9 = vsyncpa [#allocation3], 0  ;;  %s638_s0 = inlined_call_operand.vmem [shape: f32[2,4,256], index: 0, kind: input, shape index: {}]   ;;  %s639_s1 = inlined_call_operand.vmem [shape: f32[4,2], index: 1, kind: input, shape index: {}]   ;;  %s640_s2 = inlined_call_operand.vmem [shape: f32[4,2], index: 2, kind: input, shape index: {}]   ;;  %s641_s3 = inlined_call_operand.vmem [shape: f32[4,1], index: 3, kind: input, shape index: {}]   ;;  %s642_s4 = inlined_call_operand.hbm [shape: f32[2,4,256], index: 4, kind: output, shape index: {}]  }
   0x1   :  { %11 = vsyncpa [#allocation3 + $0x1], 0  ;;  %s518_s15 = smov 0   ;;  %s520_s16 = smov 0  }
   0x2   :  { %s522_s17 = smov 0   ;;  %s524_s18 = smov 0  }
   0x3 LB: > { %s539_s19 = sadd.s32 4294967295, %s488_s18   ;;  %s354_s20 = sadd.s32 4294967294, %s488_s18   ;;  %s488_s18 = sphi %s524_s18, %s648_s18   ;;  %s484_s17 = sphi %s522_s17, %s647_s17   ;;  %s480_s16 = sphi %s520_s16, %s646_s16   ;;  %s476_s15 = sphi %s518_s15, %s645_s15  }
   0x4   : > { %s543_s21 = sadd.s32 1, %s488_s18   ;;  %s113_s22 = sadd.s32 1, %s484_s17 }
   0x5   : > { %s110_s23 = ssub.s32 %s488_s18, %s543_s21  ;;  %p123_p0 = scmp.ne.s32.totalorder %s484_s17, %s480_s16 }
   0x6   : > { %p111_p1 = scmp.eq.s32.totalorder %s110_s23, 0  ;;  %p124_p2 = scmp.eq.s32.totalorder %s539_s19, 1 }
   0x7   : > { %p129_p3 = scmp.ne.s32.totalorder %s480_s16, %s476_s15  ;;  %p130_p4 = scmp.eq.s32.totalorder %s354_s20, 1 }
   0x8   : > { %s554_s24 = scalar_select %p111_p1, %s484_s17, %s113_s22  }
   0x9   : > { %p556_p5 = por %p124_p2, %p123_p0  ;;  %p560_p6 = por %p130_p4, %p129_p3 }
   0xa   : > { %p357_p7 = scmp.ge.s32.totalorder %s488_s18, 1  ;;  %p165_p8 = scmp.lt.s32.totalorder %s488_s18, 3 }
   0xc   : > { %p166_p9 = pnand %p357_p7, %p165_p8 }
   0xd   : > { %p191_p10 = scmp.lt.s32.totalorder (!%p166_p9), %s539_s19, 1  ;;  %vm200_vm0 = vcmask (!%p166_p9), 1043456   ;;  %v490_v5 = vmov (!%p166_p9), 0   ;;  %v229_v6 = vld [vmem:[%s641_s3] sm:$0xf] (!%p166_p9)  ;;  %vm209_vm1 = vcmask (!%p166_p9), 11264   ;;  %v237_v24 = vlaneseq (!%p166_p9) }
   0xe   : > { %169 = sbr.rel (%p166_p9) target bundleno = 383 (0x17f), region = 36  ;;  %412 = vset.pattern.permute.xlu0 (!%p166_p9), %v490_v5  ;;  %v207_v7 = vld [vmem:[%s639_s1] sm:$0xf] (!%p166_p9)  ;;  %v491_v22 = vmov (!%p166_p9), 839922192   ;;  %s188_s12 = sand.u32 (!%p166_p9), 1, %s480_s16  }
   0xf   : > { %v218_v18 = vld [vmem:[%s640_s2] sm:$0xf] (!%p166_p9)  ;;  %v235_v23 = vunpack.c.l.s4 (!%p166_p9), %v491_v22  ;;  %v238_v26 = vshrl.u32 (!%p166_p9), %v237_v24, 7  ;;  %s358_s13 = sshll.u32 (!%p166_p9), %s188_s12, 3  ;;  %s370_s14 = sshll.u32 (!%p166_p9), %s539_s19, 7 }
  0x10   : > { %s190_s20 = scalar_lea.vmem (!%p166_p9), [#allocation2], %s358_s13  ;;  %s281_s29 = scalar_lea.sflag (!%p166_p9), [#allocation3], %s188_s12 }
  0x11   : > { %v236_v25 = vunpack.c.0.s8 (!%p166_p9), %v235_v23  ;;  %s295_s22 = sshll.u32 (!%p166_p9), %s190_s20, 4  ;;  %s598_s22 = int_to_ptr.vmem [resolvable:$true] %s295_s22 }
  0x12   : > { %s426_s30 = scalar_lea.vmem (!%p166_p9), %s598_s22, 128 }
  0x13   : > { %v239_v27 = vsub.s32 (!%p166_p9), %v236_v25, %v238_v26  ;;  %p427_p11 = scmp.ne.s32.totalorder (!%p166_p9), %s598_s22, %s426_s30 }
  0x15   : > { %s192_s27 = scalar_select %p191_p10, %s539_s19, 1 }
  0x16   : > { %p428_p12 = pnand %p427_p11, %p556_p5  ;;  %s492_s19 = smov [#allocation2]  }
  0x17   : > { %s369_s28 = sshll.u32 %s192_s27, 3 }
  0x18   : > { %s195_s5 = scalar_lea.vmem %s638_s0, %s369_s28  ;;  %s596_s28 = scalar_lea.hbm %s642_s4, %s370_s14 }
  0x19   : > { %v571_v0 = vld [vmem:[%s195_s5] sm:$0xff]  ;;  %p429_p13 = pneg %p428_p12  ;;  %s430_s5 = sshll.u32 %s492_s19, 4  ;;  %s431_s5 = int_to_ptr.vmem [resolvable:$false] %s430_s5 }
  0x1a   : > { %v198_v1 = vcombine.high %v571_v0, %v571_v0  ;;  %v201_v2 = vsel %vm200_vm0, %v571_v0, 0.0  ;;  %s432_s6 = scalar_lea.vmem %s431_s5, 256  ;;  %p433_p0 = scmp.lt.s32.totalorder %s598_s22, %s431_s5 }
  0x1b   : > { %p434_p1 = scmp.lt.s32.totalorder %s432_s6, %s426_s30 }
  0x1c   : > { %v202_v3 = vsel %vm200_vm0, %v198_v1, 0.0 }
  0x1d   : > { %v203_v4 = vadd.f32 %v202_v3, %v201_v2  ;;  %p435_p2 = por %p434_p1, %p433_p0 }
  0x1f   : > { %204 = vadd.xlane.f32.xlu0 %v203_v4  ;;  %p436_p3 = pnand %p435_p2, %p429_p13 }
  0x35   : > { %232 = vperm.xlu0 %412, %v229_v6  }
  0xac   : > { %v205_v8 = vpop.xlane.xlu0 %204 }
  0xad   : > { %v206_v9 = vmul.f32 0.00390625, %v205_v8 }
  0xaf   : > { %v208_v10 = vmul.f32 %v207_v7, %v206_v9 }
  0xb1   : > { %v210_v11 = vsel %vm209_vm1, %v208_v10, 0.0 }
  0xb2   : > { %v211_v12 = vrot.slane %v210_v11, 4 }
  0xb4   : > { %v212_v13 = vadd.f32 %v211_v12, %v210_v11  ;;  %v233_v28 = vpop.permute.xlu0 %232 }
  0xb5   : > { %v240_v29 = vrot.slane %v233_v28, %v239_v27 }
  0xb6   : > { %v213_v14 = vrot.slane %v212_v13, 2 }
  0xb7   : > { %v242_v30 = vmul.f32 %v240_v29, %v571_v0 }
  0xb8   : > { %v214_v15 = vadd.f32 %v213_v14, %v212_v13 }
  0xb9   : > { %v244_v31 = vcombine.high %v242_v30, %v242_v30  ;;  %v246_v32 = vsel %vm200_vm0, %v242_v30, 0.0 }
  0xba   : > { %v215_v16 = vrot.slane %v214_v15, 1  ;;  %v247_v34 = vrot.slane %v246_v32, 4 }
  0xbb   : > { %v253_v33 = vsel %vm200_vm0, %v244_v31, 0.0 }
  0xbc   : > { %v216_v17 = vadd.f32 %v215_v16, %v214_v15  ;;  %v254_v35 = vrot.slane %v253_v33, 4  ;;  %v248_v36 = vadd.f32 %v247_v34, %v246_v32 }
  0xbe   : > { %v217_v19 = vmax.f32 %v216_v17, 0.0  ;;  %v255_v37 = vadd.f32 %v254_v35, %v253_v33  ;;  %v249_v38 = vrot.slane %v248_v36, 2 }
  0xc0   : > { %v219_v20 = vmul.f32 %v218_v18, %v217_v19  ;;  %v256_v39 = vrot.slane %v255_v37, 2  ;;  %v250_v40 = vadd.f32 %v249_v38, %v248_v36 }
  0xc2   : > { %v220_v21 = vsel %vm209_vm1, %v219_v20, 0.0  ;;  %v257_v41 = vadd.f32 %v256_v39, %v255_v37  ;;  %v251_v42 = vrot.slane %v250_v40, 1 }
  0xc3   : > { %221 = vadd.xlane.f32.xlu1 %v220_v21 }
  0xc4   : > { %v258_v43 = vrot.slane %v257_v41, 1  ;;  %v252_v44 = vadd.f32 %v251_v42, %v250_v40 }
  0xc6   : > { %v259_v45 = vadd.f32 %v258_v43, %v257_v41  ;;  %v362_v46 = vmul.f32 -1.442695, %v252_v44 }
  0xc8   : > { %v363_v47 = vmul.f32 -1.442695, %v259_v45  ;;  %414 = vpow2.f32 %v362_v46 }
  0xca   : > { %416 = vpow2.f32 %v363_v47 }
  0xd2   : > { %v415_v50 = vpop.eup %414 }
  0xd3   : > { %v266_v52 = vadd.f32 1.0, %v415_v50 }
  0xd4   : > { %v417_v51 = vpop.eup %416 }
  0xd5   : > { %v267_v53 = vadd.f32 1.0, %v417_v51 }
 0x150   : > { %v222_v48 = vpop.xlane.xlu1 %221 }
 0x151   : > { %v361_v49 = vmul.f32 -1.442695, %v222_v48 }
 0x153   : > { %418 = vpow2.f32 %v361_v49 }
 0x154   : > { %420 = vrcp.f32 %v266_v52 }
 0x155   : > { %422 = vrcp.f32 %v267_v53 }
 0x15d   : > { %v419_v54 = vpop.eup %418 }
 0x15e   : > { %v226_v55 = vadd.f32 1.0, %v419_v54  ;;  %v421_v56 = vpop.eup %420 }
 0x15f   : > { %v423_v57 = vpop.eup %422 }
 0x160   : > { %424 = vrcp.f32 %v226_v55 }
 0x16a   : > { %v425_v58 = vpop.eup %424 }
 0x16b   : > { %v272_v59 = vadd.f32 %v425_v58, %v421_v56  ;;  %v273_v60 = vadd.f32 %v425_v58, %v423_v57 }
 0x16d   : > { %v276_v61 = vcombine.low %v272_v59, %v273_v60 }
 0x16f   : > { %v278_v62 = vmul.f32 %v276_v61, %v571_v0 }
 0x171   : > { %279 = vst [vmem:[%s190_s20] sm:$0xff] %v278_v62 }
 0x172   : > { %439 = shalt.err (!%p436_p3)
}
 0x173   : > { %s440_s7 = scalar_lea.hbm %s596_s28, 128  ;;  %s444_s10 = scalar_lea.hbm %s642_s4, 256 }
 0x174   : > { %p441_p4 = scmp.ne.s32.totalorder %s596_s28, %s440_s7  ;;  %p445_p9 = scmp.lt.u32.totalorder %s596_s28, %s642_s4 }
 0x175   : > { %p446_p10 = scmp.lt.u32.totalorder %s444_s10, %s440_s7  ;;  %p448_p12 = scmp.lt.u32.totalorder %s440_s7, %s596_s28 }
 0x176   : > { %p442_p7 = pnand %p441_p4, %p556_p5 }
 0x177   : > { %p447_p11 = por %p446_p10, %p445_p9 }
 0x178   : > { %p443_p8 = pneg %p442_p7 }
 0x179   : > { %p449_p13 = por %p448_p12, %p447_p11 }
 0x17b   : > { %p450_p0 = pnand %p449_p13, %p443_p8 }
 0x17d   : > { %453 = shalt.err (!%p450_p0)
}
 0x17e   : > { %371 = dma.vmem_to_hbm [thread:$0]  (%p556_p5), %s598_s22, 128, %s596_s28, %s281_s29  }
 0x17f PF: > { %p377_p1 = scmp.ge.s32.totalorder %s488_s18, 2  ;;  %s307_s13 = sand.u32 1, %s476_s15  }
 0x180   : > { %s308_s14 = scalar_lea.sflag [#allocation3], %s307_s13 }
 0x181   : > { %p374_p2 = pnand %p377_p1, %p560_p6 }
 0x183   : > { %471 = dma.done.wait (!%p374_p2), %s308_s14, 128  }
 0x184   : > { %473 = vsyncadd (!%p374_p2), %s308_s14, 4294967168  ;;  %p14_p3 = scmp.ge.s32.totalorder %s543_s21, 4   ;;  %s645_s15 = smov %s480_s16 }
 0x185   : > { %s646_s16 = smov %s484_s17  ;;  %s647_s17 = smov %s554_s24 }
 0x186   : > { %s648_s18 = smov %s543_s21  ;;  %16 = sbr.rel (!%p14_p3) target bundleno = 3 (0x3), region = 71 }
 0x18d   :  { %313 = vsyncpa [#allocation3], 1 }
 0x18e   :  { %315 = vsyncpa [#allocation3 + $0x1], 1 }

</bundles_post_ra>
